<compile_context>
chip_gen: v6e
topology: v6e:2x2x1
jax: 0.10.0
libtpu: 0.0.40
codegen_flags: <defaults>
</compile_context>

<pallas_src>
import math
import jax
import jax.numpy as jnp
from jax.experimental import pallas as pl
from jax.experimental.pallas import tpu as pltpu

LAYERS = (32, 32, 64, 64)
LANE = 128


def _round_up(n, m):
    return ((n + m - 1) // m) * m


def _device_kind():
    try:
        return jax.devices()[0].device_kind.lower()
    except Exception:
        return ""


# ----------------------------------------------------------------------------
# Parameter init (mimics torch.nn.Linear defaults: uniform +-1/sqrt(fan_in)).
# Returns a flat list [w0, b0, w1, b1, ...] with w_i shaped [in, out]
# (pre-transposed for x @ W) and b_i shaped [1, out], all float32.
# ----------------------------------------------------------------------------
def init_regular_net_params(key, input_dim, output_dim, layers=LAYERS,
                            dtype=jnp.float32):
    squeeze_out = output_dim == 0
    if squeeze_out:
        output_dim = 1
    dims_in = (input_dim,) + tuple(layers)
    dims_out = tuple(layers) + (output_dim,)
    params = []
    for in_d, out_d in zip(dims_in, dims_out):
        key, kw, kb = jax.random.split(key, 3)
        bound = 1.0 / math.sqrt(in_d)
        w = jax.random.uniform(kw, (in_d, out_d), dtype, -bound, bound)
        b = jax.random.uniform(kb, (1, out_d), dtype, -bound, bound)
        params += [w, b]
    return params, squeeze_out


# ----------------------------------------------------------------------------
# One-time packing, padded to full 128-lane tiles (zero padding is exact:
# padded lanes stay 0 through bias/ReLU and contribute nothing downstream).
# ----------------------------------------------------------------------------
def _pack_params_padded(params):
    n_layers = len(params) // 2
    dims_in = tuple(params[2 * i].shape[0] for i in range(n_layers))
    dims_out = tuple(params[2 * i].shape[1] for i in range(n_layers))
    pack_dim = _round_up(max(dims_out + dims_in[1:]), LANE)

    # Layer-0 weight kept separate: [in_dim, pack_dim] bf16.
    w0 = jnp.zeros((dims_in[0], pack_dim), jnp.bfloat16)
    w0 = w0.at[:, :dims_out[0]].set(params[0].astype(jnp.bfloat16))

    # Layers 1..n-1 packed: [n_layers-1, pack_dim, pack_dim] bf16.
    w_pack = jnp.zeros((n_layers - 1, pack_dim, pack_dim), jnp.bfloat16)
    # All biases packed: [n_layers, 1, pack_dim] f32 (added on f32 accumulator).
    b_pack = jnp.zeros((n_layers, 1, pack_dim), jnp.float32)
    b_pack = b_pack.at[0, :, :dims_out[0]].set(params[1].astype(jnp.float32))
    for i in range(1, n_layers):
        w, b = params[2 * i], params[2 * i + 1]
        w_pack = w_pack.at[i - 1, :w.shape[0], :w.shape[1]].set(
            w.astype(jnp.bfloat16))
        b_pack = b_pack.at[i, :, :b.shape[1]].set(b.astype(jnp.float32))
    return w0, w_pack, b_pack, dims_in, dims_out, pack_dim


# ----------------------------------------------------------------------------
# Generation-aware tiling heuristics.
# ----------------------------------------------------------------------------
def _pick_vmem_limit(kind):
    if "v6" in kind:
        return 96 * 1024 * 1024    # 128 MiB physical
    if "v5" in kind:
        return 64 * 1024 * 1024    # raise from the 16 MiB scoped default
    return 48 * 1024 * 1024        # v7x: 64 MiB physical, leave headroom


def _pick_block_batch(B, in_dim, pack_dim, x_itemsize, carry_itemsize,
                      vmem_limit, kind):
    target = 8192 if "v6" in kind else 4096
    # VMEM budget per batch row: x (double buffered) + padded out (double
    # buffered, f32/x dtype) + f32 accumulator/bias temp + carried activation.
    per_row = (2 * in_dim * x_itemsize
               + 2 * pack_dim * 4
               + 2 * pack_dim * 4
               + 2 * pack_dim * carry_itemsize)
    budget = int(vmem_limit * 0.6)   # headroom for params + compiler scratch
    bb_budget = max(8, (budget // max(per_row, 1)) // 8 * 8)
    bb = max(8, min(target, bb_budget, _round_up(B, 8)))
    # v7x megacore: the "parallel" grid axis is sharded across 2 TensorCores ->
    # keep an even number (>= 2) of grid steps so neither core idles on a tail.
    if ("v5" not in kind) and ("v6" not in kind) and B >= 16:
        steps = pl.cdiv(B, bb)
        if steps < 2:
            steps = 2
        elif steps % 2 == 1:
            steps += 1
        bb = max(8, _round_up(pl.cdiv(B, steps), 8))
    return bb


# ----------------------------------------------------------------------------
# Fused MLP forward factory: packs once, returns a jitted forward(x).
# ----------------------------------------------------------------------------
def make_regular_net_forward(params, squeeze_out, *, block_batch=None):
    w0, w_pack, b_pack, dims_in, dims_out, pack_dim = _pack_params_padded(params)
    n_layers = len(dims_in)
    in_dim, out_dim = dims_in[0], dims_out[-1]

    kind = _device_kind()
    # bf16 activation carry on chips with a bf16 VALU (v6e / v7x); f32 on v5e.
    carry_dtype = jnp.float32 if "v5" in kind else jnp.bfloat16
    vmem_limit = _pick_vmem_limit(kind)

    flops_per_row = 2 * sum(i * o for i, o in zip(dims_in, dims_out))
    param_bytes = int(w0.size) * 2 + int(w_pack.size) * 2 + int(b_pack.size) * 4

    def kernel(x_ref, w0_ref, w_ref, b_ref, o_ref):
        # Layer 0: [bb, in_dim] @ [in_dim, 128] on the MXU, f32 accumulation;
        # bias + ReLU + carry-cast fused into one elementwise pass.
        h = jnp.dot(x_ref[...].astype(jnp.bfloat16), w0_ref[...],
                    preferred_element_type=jnp.float32)
        h = jnp.maximum(h + b_ref[0], 0.0).astype(carry_dtype)
        for li in range(1, n_layers):
            acc = jnp.dot(h.astype(jnp.bfloat16), w_ref[li - 1],
                          preferred_element_type=jnp.float32)
            if li != n_layers - 1:
                h = jnp.maximum(acc + b_ref[li], 0.0).astype(carry_dtype)
            else:
                # Lane-dense 128-wide store (unmasked vst); padded lanes are
                # exact zeros and get sliced off in the wrapper.
                o_ref[...] = (acc + b_ref[li]).astype(o_ref.dtype)

    @jax.jit
    def _fwd(x, w0_a, w_pack_a, b_pack_a):
        B = x.shape[0]
        if block_batch is None:
            bb = _pick_block_batch(B, in_dim, pack_dim, x.dtype.itemsize,
                                   jnp.dtype(carry_dtype).itemsize,
                                   vmem_limit, kind)
        else:
            bb = max(8, min(_round_up(block_batch, 8), _round_up(B, 8)))
        grid = (pl.cdiv(B, bb),)

        cost = pl.CostEstimate(
            flops=flops_per_row * B,
            transcendentals=0,
            bytes_accessed=(x.size * x.dtype.itemsize
                            + B * pack_dim * x.dtype.itemsize
                            + param_bytes),
        )

        out_padded = pl.pallas_call(
            kernel,
            out_shape=jax.ShapeDtypeStruct((B, pack_dim), x.dtype),
            grid_spec=pltpu.PrefetchScalarGridSpec(
                num_scalar_prefetch=0,
                grid=grid,
                in_specs=[
                    # x streams over the batch (default double buffering).
                    pl.BlockSpec((bb, in_dim), lambda i: (i, 0)),
                    # Packed params: constant block index -> DMA'd once, resident.
                    pl.BlockSpec(w0_a.shape, lambda i: (0, 0)),
                    pl.BlockSpec(w_pack_a.shape, lambda i: (0, 0, 0)),
                    pl.BlockSpec(b_pack_a.shape, lambda i: (0, 0, 0)),
                ],
                out_specs=pl.BlockSpec((bb, pack_dim), lambda i: (i, 0)),
            ),
            compiler_params=pltpu.CompilerParams(
                dimension_semantics=("parallel",),
                vmem_limit_bytes=vmem_limit),
            cost_estimate=cost,
        )(x, w0_a, w_pack_a, b_pack_a)

        out = out_padded[:, :out_dim]
        if squeeze_out:
            out = out[..., 0]
        return out

    def forward(x):
        # On v5e the caller may pass x already in bf16 to halve the only real
        # HBM stream; the kernel feeds bf16 to the MXU either way.
        return _fwd(x, w0, w_pack, b_pack)

    return forward


# ----------------------------------------------------------------------------
# Plain-JAX references (f32 and bf16-operand variants) matching the PyTorch
# module's forward.
# ----------------------------------------------------------------------------
def _reference_forward(x, params, squeeze_out, dot_dtype=jnp.float32):
    h = x.astype(jnp.float32)
    n_layers = len(params) // 2
    for li in range(n_layers):
        w, b = params[2 * li], params[2 * li + 1]
        h = jnp.dot(h.astype(dot_dtype), w.astype(dot_dtype),
                    preferred_element_type=jnp.float32) + b.astype(jnp.float32)
        if li != n_layers - 1:
            h = jnp.maximum(h, 0.0)
    h = h.astype(x.dtype)
    if squeeze_out:
        h = h[..., 0]
    return h


if __name__ == "__main__":
    key = jax.random.PRNGKey(0)
    k_params, k_x = jax.random.split(key)

    batch, input_dim, output_dim = 8, 16, 8
    params, squeeze_out = init_regular_net_params(k_params, input_dim, output_dim)
    x = jax.random.normal(k_x, (batch, input_dim), jnp.float32)

    forward = make_regular_net_forward(params, squeeze_out)
    y = jax.block_until_ready(forward(x))

    # Tight check vs a reference that also feeds bf16 operands to the MXU
    # (same numerics as the kernel), and a loose sanity check vs pure f32.
    # NOTE: bf16 weights are an intentional numerics change vs the f32
    # PyTorch module (validated to 5e-2 against the f32 reference).
    y_ref_bf16 = _reference_forward(x, params, squeeze_out, dot_dtype=jnp.bfloat16)
    y_ref_f32 = _reference_forward(x, params, squeeze_out, dot_dtype=jnp.float32)

    assert y.shape == (batch, output_dim)
    assert jnp.allclose(y, y_ref_bf16, atol=1e-3, rtol=1e-3), \
        "mismatch vs bf16-operand reference"
    assert jnp.allclose(y, y_ref_f32, atol=5e-2, rtol=5e-2), \
        "mismatch vs f32 reference (beyond bf16 tolerance)"

    print("KERNEL_OK")
</pallas_src>

<mosaic_0001>
module attributes {stable_mosaic.version = 11 : i64} {
  func.func @kernel(%arg0: i32, %arg1: memref<8x16xf32, #tpu.memory_space<vmem>>, %arg2: memref<16x128xbf16, #tpu.memory_space<vmem>>, %arg3: memref<4x128x128xbf16, #tpu.memory_space<vmem>>, %arg4: memref<5x1x128xf32, #tpu.memory_space<vmem>>, %arg5: memref<8x128xf32, #tpu.memory_space<vmem>>) attributes {dimension_semantics = [#tpu.dimension_semantics<parallel>], iteration_bounds = array<i64: 1>, scalar_prefetch = 0 : i64, scratch_operands = 0 : i64, tpu.core_type = #tpu.core_type<tc>, window_params = [{transform_indices = @transform_0, window_bounds = array<i64: 8, 16>}, {pipeline_mode = #tpu.pipeline_mode<synchronous>, transform_indices = @transform_1, window_bounds = array<i64: 16, 128>}, {pipeline_mode = #tpu.pipeline_mode<synchronous>, transform_indices = @transform_2, window_bounds = array<i64: 4, 128, 128>}, {pipeline_mode = #tpu.pipeline_mode<synchronous>, transform_indices = @transform_3, window_bounds = array<i64: 5, 1, 128>}, {transform_indices = @transform_4, window_bounds = array<i64: 8, 128>}]} {
    %c0 = arith.constant 0 : index
    %c0_0 = arith.constant 0 : index
    %0 = vector.load %arg1[%c0, %c0_0] : memref<8x16xf32, #tpu.memory_space<vmem>>, vector<8x16xf32>
    %1 = arith.truncf %0 : vector<8x16xf32> to vector<8x16xbf16>
    %c0_1 = arith.constant 0 : index
    %c0_2 = arith.constant 0 : index
    %2 = vector.load %arg2[%c0_1, %c0_2] : memref<16x128xbf16, #tpu.memory_space<vmem>>, vector<16x128xbf16>
    %cst = arith.constant dense<0.000000e+00> : vector<8x128xf32>
    %3 = tpu.matmul %1, %2, %cst {dimension_numbers = #tpu.dot_dimension_numbers<[1], [0], [0], [1], [0, 0, 1, 1], [], []>} : vector<8x16xbf16>, vector<16x128xbf16>, vector<8x128xf32> -> vector<8x128xf32>
    %c0_3 = arith.constant 0 : index
    %c0_4 = arith.constant 0 : index
    %c0_5 = arith.constant 0 : index
    %4 = vector.load %arg4[%c0_3, %c0_4, %c0_5] : memref<5x1x128xf32, #tpu.memory_space<vmem>>, vector<1x1x128xf32>
    %5 = vector.shape_cast %4 : vector<1x1x128xf32> to vector<1x128xf32>
    %6 = vector.broadcast %5 : vector<1x128xf32> to vector<8x128xf32>
    %7 = arith.addf %3, %6 : vector<8x128xf32>
    %cst_6 = arith.constant 0.000000e+00 : f32
    %8 = vector.broadcast %cst_6 : f32 to vector<8x128xf32>
    %9 = arith.maximumf %7, %8 : vector<8x128xf32>
    %10 = arith.truncf %9 : vector<8x128xf32> to vector<8x128xbf16>
    %c0_7 = arith.constant 0 : index
    %c0_8 = arith.constant 0 : index
    %c0_9 = arith.constant 0 : index
    %11 = vector.load %arg3[%c0_7, %c0_8, %c0_9] : memref<4x128x128xbf16, #tpu.memory_space<vmem>>, vector<1x128x128xbf16>
    %12 = vector.shape_cast %11 : vector<1x128x128xbf16> to vector<128x128xbf16>
    %cst_10 = arith.constant dense<0.000000e+00> : vector<8x128xf32>
    %13 = tpu.matmul %10, %12, %cst_10 {dimension_numbers = #tpu.dot_dimension_numbers<[1], [0], [0], [1], [0, 0, 1, 1], [], []>} : vector<8x128xbf16>, vector<128x128xbf16>, vector<8x128xf32> -> vector<8x128xf32>
    %c1 = arith.constant 1 : index
    %c0_11 = arith.constant 0 : index
    %c0_12 = arith.constant 0 : index
    %14 = vector.load %arg4[%c1, %c0_11, %c0_12] : memref<5x1x128xf32, #tpu.memory_space<vmem>>, vector<1x1x128xf32>
    %15 = vector.shape_cast %14 : vector<1x1x128xf32> to vector<1x128xf32>
    %16 = vector.broadcast %15 : vector<1x128xf32> to vector<8x128xf32>
    %17 = arith.addf %13, %16 : vector<8x128xf32>
    %cst_13 = arith.constant 0.000000e+00 : f32
    %18 = vector.broadcast %cst_13 : f32 to vector<8x128xf32>
    %19 = arith.maximumf %17, %18 : vector<8x128xf32>
    %20 = arith.truncf %19 : vector<8x128xf32> to vector<8x128xbf16>
    %c1_14 = arith.constant 1 : index
    %c0_15 = arith.constant 0 : index
    %c0_16 = arith.constant 0 : index
    %21 = vector.load %arg3[%c1_14, %c0_15, %c0_16] : memref<4x128x128xbf16, #tpu.memory_space<vmem>>, vector<1x128x128xbf16>
    %22 = vector.shape_cast %21 : vector<1x128x128xbf16> to vector<128x128xbf16>
    %cst_17 = arith.constant dense<0.000000e+00> : vector<8x128xf32>
    %23 = tpu.matmul %20, %22, %cst_17 {dimension_numbers = #tpu.dot_dimension_numbers<[1], [0], [0], [1], [0, 0, 1, 1], [], []>} : vector<8x128xbf16>, vector<128x128xbf16>, vector<8x128xf32> -> vector<8x128xf32>
    %c2 = arith.constant 2 : index
    %c0_18 = arith.constant 0 : index
    %c0_19 = arith.constant 0 : index
    %24 = vector.load %arg4[%c2, %c0_18, %c0_19] : memref<5x1x128xf32, #tpu.memory_space<vmem>>, vector<1x1x128xf32>
    %25 = vector.shape_cast %24 : vector<1x1x128xf32> to vector<1x128xf32>
    %26 = vector.broadcast %25 : vector<1x128xf32> to vector<8x128xf32>
    %27 = arith.addf %23, %26 : vector<8x128xf32>
    %cst_20 = arith.constant 0.000000e+00 : f32
    %28 = vector.broadcast %cst_20 : f32 to vector<8x128xf32>
    %29 = arith.maximumf %27, %28 : vector<8x128xf32>
    %30 = arith.truncf %29 : vector<8x128xf32> to vector<8x128xbf16>
    %c2_21 = arith.constant 2 : index
    %c0_22 = arith.constant 0 : index
    %c0_23 = arith.constant 0 : index
    %31 = vector.load %arg3[%c2_21, %c0_22, %c0_23] : memref<4x128x128xbf16, #tpu.memory_space<vmem>>, vector<1x128x128xbf16>
    %32 = vector.shape_cast %31 : vector<1x128x128xbf16> to vector<128x128xbf16>
    %cst_24 = arith.constant dense<0.000000e+00> : vector<8x128xf32>
    %33 = tpu.matmul %30, %32, %cst_24 {dimension_numbers = #tpu.dot_dimension_numbers<[1], [0], [0], [1], [0, 0, 1, 1], [], []>} : vector<8x128xbf16>, vector<128x128xbf16>, vector<8x128xf32> -> vector<8x128xf32>
    %c3 = arith.constant 3 : index
    %c0_25 = arith.constant 0 : index
    %c0_26 = arith.constant 0 : index
    %34 = vector.load %arg4[%c3, %c0_25, %c0_26] : memref<5x1x128xf32, #tpu.memory_space<vmem>>, vector<1x1x128xf32>
    %35 = vector.shape_cast %34 : vector<1x1x128xf32> to vector<1x128xf32>
    %36 = vector.broadcast %35 : vector<1x128xf32> to vector<8x128xf32>
    %37 = arith.addf %33, %36 : vector<8x128xf32>
    %cst_27 = arith.constant 0.000000e+00 : f32
    %38 = vector.broadcast %cst_27 : f32 to vector<8x128xf32>
    %39 = arith.maximumf %37, %38 : vector<8x128xf32>
    %40 = arith.truncf %39 : vector<8x128xf32> to vector<8x128xbf16>
    %c3_28 = arith.constant 3 : index
    %c0_29 = arith.constant 0 : index
    %c0_30 = arith.constant 0 : index
    %41 = vector.load %arg3[%c3_28, %c0_29, %c0_30] : memref<4x128x128xbf16, #tpu.memory_space<vmem>>, vector<1x128x128xbf16>
    %42 = vector.shape_cast %41 : vector<1x128x128xbf16> to vector<128x128xbf16>
    %cst_31 = arith.constant dense<0.000000e+00> : vector<8x128xf32>
    %43 = tpu.matmul %40, %42, %cst_31 {dimension_numbers = #tpu.dot_dimension_numbers<[1], [0], [0], [1], [0, 0, 1, 1], [], []>} : vector<8x128xbf16>, vector<128x128xbf16>, vector<8x128xf32> -> vector<8x128xf32>
    %c4 = arith.constant 4 : index
    %c0_32 = arith.constant 0 : index
    %c0_33 = arith.constant 0 : index
    %44 = vector.load %arg4[%c4, %c0_32, %c0_33] : memref<5x1x128xf32, #tpu.memory_space<vmem>>, vector<1x1x128xf32>
    %45 = vector.shape_cast %44 : vector<1x1x128xf32> to vector<1x128xf32>
    %46 = vector.broadcast %45 : vector<1x128xf32> to vector<8x128xf32>
    %47 = arith.addf %43, %46 : vector<8x128xf32>
    %c0_34 = arith.constant 0 : index
    %c0_35 = arith.constant 0 : index
    %48 = vector.load %arg5[%c0_34, %c0_35] : memref<8x128xf32, #tpu.memory_space<vmem>>, vector<8x128xf32>
    tpu.vector_store %arg5[%c0_34, %c0_35], %47 {strides = array<i32>} : memref<8x128xf32, #tpu.memory_space<vmem>>, vector<8x128xf32>,
    return
  }
  func.func @transform_0(%arg0: i32) -> (i32, i32) {
    %c0_i32 = arith.constant 0 : i32
    %c0_i32_0 = arith.constant 0 : i32
    return %arg0, %c0_i32 : i32, i32
  }
  func.func @transform_1(%arg0: i32) -> (i32, i32) {
    %c0_i32 = arith.constant 0 : i32
    %c0_i32_0 = arith.constant 0 : i32
    %c0_i32_1 = arith.constant 0 : i32
    return %c0_i32, %c0_i32_0 : i32, i32
  }
  func.func @transform_2(%arg0: i32) -> (i32, i32, i32) {
    %c0_i32 = arith.constant 0 : i32
    %c0_i32_0 = arith.constant 0 : i32
    %c0_i32_1 = arith.constant 0 : i32
    %c0_i32_2 = arith.constant 0 : i32
    return %c0_i32, %c0_i32_0, %c0_i32_1 : i32, i32, i32
  }
  func.func @transform_3(%arg0: i32) -> (i32, i32, i32) {
    %c0_i32 = arith.constant 0 : i32
    %c0_i32_0 = arith.constant 0 : i32
    %c0_i32_1 = arith.constant 0 : i32
    %c0_i32_2 = arith.constant 0 : i32
    return %c0_i32, %c0_i32_0, %c0_i32_1 : i32, i32, i32
  }
  func.func @transform_4(%arg0: i32) -> (i32, i32) {
    %c0_i32 = arith.constant 0 : i32
    %c0_i32_0 = arith.constant 0 : i32
    return %arg0, %c0_i32 : i32, i32
  }
}

</mosaic_0001>

<bundles_post_ra>
// kernel: _fwd.1
= control target key start
LH: loop header
LB: loop body
LE: loop exit
PB: predicated region body
PF: predicated region fallthrough
CT: control target
= control target key end

     0   :  { %9 = vsyncpa [#allocation3], 0  ;;  %s992_s0 = inlined_call_operand.hbm [shape: f32[8,16], index: 0, kind: input, shape index: {}]   ;;  %s993_s1 = inlined_call_operand.hbm [shape: bf16[16,128], index: 1, kind: input, shape index: {}]   ;;  %s994_s2 = inlined_call_operand.hbm [shape: bf16[4,128,128], index: 2, kind: input, shape index: {}]   ;;  %s995_s3 = inlined_call_operand.vmem [shape: f32[5,1,128], index: 3, kind: input, shape index: {}]   ;;  %s996_s4 = inlined_call_operand.hbm [shape: f32[8,128], index: 4, kind: output, shape index: {}]  }
   0x1   :  { %10 = vsyncpa [#allocation6], 0 }
   0x2   :  { %11 = vsyncpa [#allocation4], 0  ;;  %s889_s15 = smov [#allocation5]  }
   0x3   :  { %s27_s16 = sshll.u32 %s889_s15, 4  ;;  %s28_s16 = int_to_ptr.vmem [resolvable:$true] %s27_s16 }
   0x4   :  { %s811_s17 = scalar_lea.vmem %s28_s16, 128  ;;  %p816_p1 = scmp.lt.s32.totalorder %s28_s16, %s28_s16 }
   0x5   :  { %p812_p0 = scmp.ne.s32.totalorder %s28_s16, %s811_s17  ;;  %p817_p2 = scmp.lt.s32.totalorder %s811_s17, %s811_s17 }
   0x7   :  { %p818_p3 = por %p817_p2, %p816_p1 }
   0x9   :  { %p819_p4 = pnand %p818_p3, %p812_p0 }
   0xb   :  { %822 = shalt.err (!%p819_p4)
}
   0xc   :  { %s890_s18 = smov 64   ;;  %s891_s19 = smov 4  }
   0xd   :  { %33 = dma.hbm_to_vmem [thread:$0]  %s993_s1, 128, %s28_s16, [#allocation6], %s890_s18, %s890_s18, %s891_s19  }
   0xe   :  { %s892_s22 = smov [#allocation2]   ;;  %s893_s24 = smov [#allocation7]  }
   0xf   :  { %s18_s23 = sshll.u32 %s892_s22, 4  ;;  %s39_s25 = sshll.u32 %s893_s24, 4  ;;  %s19_s23 = int_to_ptr.vmem [resolvable:$true] %s18_s23  ;;  %s40_s25 = int_to_ptr.vmem [resolvable:$true] %s39_s25 }
  0x10   :  { %s831_s26 = scalar_lea.vmem %s19_s23, 128  ;;  %p836_p6 = scmp.lt.s32.totalorder %s19_s23, %s19_s23 }
  0x11   :  { %p832_p5 = scmp.ne.s32.totalorder %s19_s23, %s831_s26  ;;  %p837_p7 = scmp.lt.s32.totalorder %s831_s26, %s831_s26 }
  0x13   :  { %p838_p8 = por %p837_p7, %p836_p6 }
  0x15   :  { %p839_p9 = pnand %p838_p8, %p832_p5 }
  0x17   :  { %842 = shalt.err (!%p839_p9)
}
  0x18   :  { %21 = dma.hbm_to_vmem [thread:$0]  %s992_s0, 128, %s19_s23, [#allocation3]  }
  0x19   :  { %s851_s29 = scalar_lea.vmem %s40_s25, 4096  ;;  %p856_p11 = scmp.lt.s32.totalorder %s40_s25, %s40_s25 }
  0x1a   :  { %p852_p10 = scmp.ne.s32.totalorder %s40_s25, %s851_s29  ;;  %p857_p12 = scmp.lt.s32.totalorder %s851_s29, %s851_s29 }
  0x1c   :  { %p858_p13 = por %p857_p12, %p856_p11 }
  0x1e   :  { %p859_p0 = pnand %p858_p13, %p852_p10 }
  0x20   :  { %862 = shalt.err (!%p859_p0)
}
  0x21   :  { %45 = dma.hbm_to_vmem [thread:$0]  %s994_s2, 4096, %s40_s25, [#allocation6], %s890_s18, %s890_s18, %s891_s19  }
  0x22   :  { %883 = dma.done.wait [#allocation3], 128  }
  0x23   :  { %884 = vsyncadd [#allocation3], 4294967168 }
  0x24   :  { %885 = dma.done.wait [#allocation6], 4224  }
  0x25   :  { %886 = vsyncadd [#allocation6], 4294963072  ;;  %v894_v0 = vmov 0.0   ;;  %vm895_vm0 = vmmov 0   ;;  %v770_v1 = vld [vmem:[#allocation5] sm:$0xff]   ;;  %v58_v2 = vld [vmem:[#allocation2] sm:$0xff] }
  0x26   :  { %676 = vmatprep.subr.bf16.mxu0 %v894_v0  ;;  %678 = vmatprep.mubr.msk.bf16.mxu0 %vm895_vm0, %v894_v0  ;;  %v59_v3 = vpack.c.bf16 %v58_v2, %v58_v2  ;;  %vm75_vm1 = vcmask 130048   ;;  %v771_v4 = vld [vmem:[#allocation7 + $0x38] sm:$0xff]   ;;  %v772_v5 = vld [vmem:[#allocation7 + $0x30] sm:$0xff]   ;;  %v773_v6 = vld [vmem:[#allocation7 + $0x28] sm:$0xff]   ;;  %s896_s13 = smov [#allocation8]  }
  0x27   :  { %682 = vmatprep.subr.bf16.mxu1 %v894_v0  ;;  %698 = vmatprep.mubr.msk.bf16.mxu1 %vm895_vm0, %v894_v0  ;;  %v774_v7 = vld [vmem:[#allocation7 + $0x20] sm:$0xff]   ;;  %v775_v8 = vld [vmem:[#allocation7 + $0x18] sm:$0xff]   ;;  %v776_v9 = vld [vmem:[#allocation7 + $0x10] sm:$0xff]   ;;  %s585_s14 = sshll.u32 %s896_s13, 4  ;;  %s586_s14 = int_to_ptr.vmem [resolvable:$true] %s585_s14 }
  0x28   :  { %677 = vmatpush3.bf16.msra.mxu0 %v770_v1  ;;  %683 = vmatpush3.bf16.msra.mxu1 %v771_v4  ;;  %v777_v10 = vld [vmem:[#allocation7 + $0x8] sm:$0xff]   ;;  %v778_v11 = vld [vmem:[#allocation7] sm:$0xff]   ;;  %v779_v12 = vld [vmem:[#allocation7 + $0x78] sm:$0xff]   ;;  %s863_s15 = scalar_lea.vmem %s586_s14, 128  ;;  %p868_p2 = scmp.lt.s32.totalorder %s586_s14, %s586_s14 }
  0x29   :  { %702 = vmatprep.subr.bf16.mxu0 %v894_v0  ;;  %684 = vmatprep.subr.bf16.mxu1 %v894_v0  ;;  %v780_v13 = vld [vmem:[#allocation7 + $0x70] sm:$0xff]   ;;  %v781_v14 = vld [vmem:[#allocation7 + $0x68] sm:$0xff]   ;;  %v782_v15 = vld [vmem:[#allocation7 + $0x60] sm:$0xff]   ;;  %p864_p1 = scmp.ne.s32.totalorder %s586_s14, %s863_s15  ;;  %p869_p3 = scmp.lt.s32.totalorder %s863_s15, %s863_s15 }
  0x2a   :  { %v783_v16 = vld [vmem:[#allocation7 + $0x58] sm:$0xff]   ;;  %v784_v17 = vld [vmem:[#allocation7 + $0x50] sm:$0xff]   ;;  %v785_v26 = vld [vmem:[#allocation7 + $0x48] sm:$0xff]  }
  0x2b   :  { %679 = vmatmul.mubr.msk.bf16.vlgmr.msra.gmra.mxu0 %vm75_vm1, %v59_v3  ;;  %v595_v18 = vld [vmem:[%s995_s3] ss:$0 sm:$0xff]  ;;  %v786_v27 = vld [vmem:[#allocation7 + $0x40] sm:$0xff]   ;;  %v787_v28 = vld [vmem:[#allocation7 + $0xb8] sm:$0xff]   ;;  %p870_p4 = por %p869_p3, %p868_p2 }
  0x2c   :  { %718 = vmatprep.mubr.msk.bf16.mxu0 %vm895_vm0, %v894_v0  ;;  %685 = vmatpush3.bf16.msra.mxu1 %v772_v5  ;;  %v788_v29 = vld [vmem:[#allocation7 + $0xb0] sm:$0xff]   ;;  %v789_v30 = vld [vmem:[#allocation7 + $0xa8] sm:$0xff]   ;;  %v790_v31 = vld [vmem:[#allocation7 + $0xa0] sm:$0xff]  }
  0x2d   :  { %686 = vmatprep.subr.bf16.mxu1 %v894_v0  ;;  %703 = vmatpush3.bf16.msra.mxu0 %v779_v12  ;;  %v791_v32 = vld [vmem:[#allocation7 + $0x98] sm:$0xff]   ;;  %v792_v33 = vld [vmem:[#allocation7 + $0x90] sm:$0xff]   ;;  %v793_v42 = vld [vmem:[#allocation7 + $0x88] sm:$0xff]   ;;  %p871_p5 = pnand %p870_p4, %p864_p1 }
  0x2e   :  { %704 = vmatprep.subr.bf16.mxu0 %v894_v0  ;;  %v599_v34 = vld [vmem:[%s995_s3 + $0x1] ss:$0 sm:$0xff]  ;;  %v794_v43 = vld [vmem:[#allocation7 + $0x80] sm:$0xff]   ;;  %v795_v44 = vld [vmem:[#allocation7 + $0xf8] sm:$0xff]  }
  0x2f   :  { %v796_v45 = vld [vmem:[#allocation7 + $0xf0] sm:$0xff]   ;;  %v797_v46 = vld [vmem:[#allocation7 + $0xe8] sm:$0xff]   ;;  %v798_v47 = vld [vmem:[#allocation7 + $0xe0] sm:$0xff]  }
  0x30   :  { %687 = vmatpush3.bf16.msra.mxu1 %v773_v6  ;;  %v799_v48 = vld [vmem:[#allocation7 + $0xd8] sm:$0xff]   ;;  %v800_v49 = vld [vmem:[#allocation7 + $0xd0] sm:$0xff]   ;;  %v801_v58 = vld [vmem:[#allocation7 + $0xc8] sm:$0xff]  }
  0x31   :  { %688 = vmatprep.subr.bf16.mxu1 %v894_v0  ;;  %705 = vmatpush3.bf16.msra.mxu0 %v780_v13  ;;  %v609_v50 = vld [vmem:[%s995_s3 + $0x2] ss:$0 sm:$0xff]  ;;  %v802_v59 = vld [vmem:[#allocation7 + $0xc0] sm:$0xff]   ;;  %v619_v60 = vld [vmem:[%s995_s3 + $0x3] ss:$0 sm:$0xff] }
  0x32   :  { %706 = vmatprep.subr.bf16.mxu0 %v894_v0  ;;  %v629_v5 = vld [vmem:[%s995_s3 + $0x4] ss:$0 sm:$0xff] }
  0x34   :  { %689 = vmatpush3.bf16.msra.mxu1 %v774_v7 }
  0x35   :  { %690 = vmatprep.subr.bf16.mxu1 %v894_v0  ;;  %707 = vmatpush3.bf16.msra.mxu0 %v781_v14 }
  0x36   :  { %708 = vmatprep.subr.bf16.mxu0 %v894_v0 }
  0x38   :  { %691 = vmatpush3.bf16.msra.mxu1 %v775_v8 }
  0x39   :  { %692 = vmatprep.subr.bf16.mxu1 %v894_v0  ;;  %709 = vmatpush3.bf16.msra.mxu0 %v782_v15 }
  0x3a   :  { %710 = vmatprep.subr.bf16.mxu0 %v894_v0 }
  0x3c   :  { %693 = vmatpush3.bf16.msra.mxu1 %v776_v9 }
  0x3d   :  { %694 = vmatprep.subr.bf16.mxu1 %v894_v0  ;;  %711 = vmatpush3.bf16.msra.mxu0 %v783_v16 }
  0x3e   :  { %712 = vmatprep.subr.bf16.mxu0 %v894_v0 }
  0x40   :  { %695 = vmatpush3.bf16.msra.mxu1 %v777_v10 }
  0x41   :  { %696 = vmatprep.subr.bf16.mxu1 %v894_v0  ;;  %713 = vmatpush3.bf16.msra.mxu0 %v784_v17 }
  0x42   :  { %714 = vmatprep.subr.bf16.mxu0 %v894_v0 }
  0x44   :  { %697 = vmatpush3.bf16.msra.mxu1 %v778_v11 }
  0x45   :  { %722 = vmatprep.subr.bf16.mxu1 %v894_v0  ;;  %715 = vmatpush3.bf16.msra.mxu0 %v785_v26 }
  0x46   :  { %716 = vmatprep.subr.bf16.mxu0 %v894_v0 }
  0x49   :  { %717 = vmatpush3.bf16.msra.mxu0 %v786_v27 }
  0x4a   :  { %742 = vmatprep.subr.bf16.mxu0 %v894_v0 }
  0xeb   :  { %v113_v19 = vpop.f32.mrf.mxu0 }
  0xec   :  { %v114_v20 = vadd.f32 %v595_v18, %v113_v19 }
  0xed   :  { %v680_v21 = vpop.f32.mrf.mxu0 }
  0xee   :  { %v119_v22 = vmax.f32 %v114_v20, 0.0 }
  0xef   :  { %v116_v23 = vpop.f32.mrf.mxu0 }
  0xf0   :  { %v120_v24 = vpack.c.bf16 %v119_v22, %v119_v22 }
  0xf1   :  { %v681_v25 = vpop.f32.mrf.mxu0 }
  0xf2   :  { %699 = vmatmul.mubr.bf16.vlgmr.msra.gmra.mxu1 %v120_v24 }
  0xf3   :  { %738 = vmatprep.mubr.msk.bf16.mxu1 %vm895_vm0, %v894_v0  ;;  %723 = vmatpush3.bf16.msra.mxu1 %v787_v28 }
  0xf4   :  { %724 = vmatprep.subr.bf16.mxu1 %v894_v0 }
  0xf7   :  { %725 = vmatpush3.bf16.msra.mxu1 %v788_v29 }
  0xf8   :  { %726 = vmatprep.subr.bf16.mxu1 %v894_v0 }
  0xfb   :  { %727 = vmatpush3.bf16.msra.mxu1 %v789_v30 }
  0xfc   :  { %728 = vmatprep.subr.bf16.mxu1 %v894_v0 }
  0xff   :  { %729 = vmatpush3.bf16.msra.mxu1 %v790_v31 }
 0x100   :  { %730 = vmatprep.subr.bf16.mxu1 %v894_v0 }
 0x103   :  { %731 = vmatpush3.bf16.msra.mxu1 %v791_v32 }
 0x104   :  { %732 = vmatprep.subr.bf16.mxu1 %v894_v0 }
 0x107   :  { %733 = vmatpush3.bf16.msra.mxu1 %v792_v33 }
 0x108   :  { %734 = vmatprep.subr.bf16.mxu1 %v894_v0 }
 0x10b   :  { %735 = vmatpush3.bf16.msra.mxu1 %v793_v42 }
 0x10c   :  { %736 = vmatprep.subr.bf16.mxu1 %v894_v0 }
 0x10f   :  { %737 = vmatpush3.bf16.msra.mxu1 %v794_v43 }
 0x1b2   :  { %v227_v35 = vpop.f32.mrf.mxu1 }
 0x1b3   :  { %v228_v36 = vadd.f32 %v599_v34, %v227_v35 }
 0x1b4   :  { %v700_v37 = vpop.f32.mrf.mxu1 }
 0x1b5   :  { %v233_v38 = vmax.f32 %v228_v36, 0.0 }
 0x1b6   :  { %v230_v39 = vpop.f32.mrf.mxu1 }
 0x1b7   :  { %v234_v40 = vpack.c.bf16 %v233_v38, %v233_v38 }
 0x1b8   :  { %v701_v41 = vpop.f32.mrf.mxu1 }
 0x1b9   :  { %719 = vmatmul.mubr.bf16.vlgmr.msra.gmra.mxu0 %v234_v40 }
 0x1ba   :  { %758 = vmatprep.mubr.msk.bf16.mxu0 %vm895_vm0, %v894_v0  ;;  %743 = vmatpush3.bf16.msra.mxu0 %v795_v44 }
 0x1bb   :  { %744 = vmatprep.subr.bf16.mxu0 %v894_v0 }
 0x1be   :  { %745 = vmatpush3.bf16.msra.mxu0 %v796_v45 }
 0x1bf   :  { %746 = vmatprep.subr.bf16.mxu0 %v894_v0 }
 0x1c2   :  { %747 = vmatpush3.bf16.msra.mxu0 %v797_v46 }
 0x1c3   :  { %748 = vmatprep.subr.bf16.mxu0 %v894_v0 }
 0x1c6   :  { %749 = vmatpush3.bf16.msra.mxu0 %v798_v47 }
 0x1c7   :  { %750 = vmatprep.subr.bf16.mxu0 %v894_v0 }
 0x1ca   :  { %751 = vmatpush3.bf16.msra.mxu0 %v799_v48 }
 0x1cb   :  { %752 = vmatprep.subr.bf16.mxu0 %v894_v0 }
 0x1ce   :  { %753 = vmatpush3.bf16.msra.mxu0 %v800_v49 }
 0x1cf   :  { %754 = vmatprep.subr.bf16.mxu0 %v894_v0 }
 0x1d2   :  { %755 = vmatpush3.bf16.msra.mxu0 %v801_v58 }
 0x1d3   :  { %756 = vmatprep.subr.bf16.mxu0 %v894_v0 }
 0x1d6   :  { %757 = vmatpush3.bf16.msra.mxu0 %v802_v59 }
 0x279   :  { %v342_v51 = vpop.f32.mrf.mxu0 }
 0x27a   :  { %v343_v52 = vadd.f32 %v609_v50, %v342_v51 }
 0x27b   :  { %v720_v53 = vpop.f32.mrf.mxu0 }
 0x27c   :  { %v348_v54 = vmax.f32 %v343_v52, 0.0 }
 0x27d   :  { %v345_v55 = vpop.f32.mrf.mxu0 }
 0x27e   :  { %v349_v56 = vpack.c.bf16 %v348_v54, %v348_v54 }
 0x27f   :  { %v721_v57 = vpop.f32.mrf.mxu0 }
 0x280   :  { %739 = vmatmul.mubr.bf16.vlgmr.msra.gmra.mxu1 %v349_v56 }
 0x340   :  { %v457_v61 = vpop.f32.mrf.mxu1 }
 0x341   :  { %v458_v62 = vadd.f32 %v619_v60, %v457_v61 }
 0x342   :  { %v740_v63 = vpop.f32.mrf.mxu1 }
 0x343   :  { %v463_v1 = vmax.f32 %v458_v62, 0.0 }
 0x344   :  { %v460_v2 = vpop.f32.mrf.mxu1 }
 0x345   :  { %v464_v3 = vpack.c.bf16 %v463_v1, %v463_v1 }
 0x346   :  { %v741_v4 = vpop.f32.mrf.mxu1 }
 0x347   :  { %759 = vmatmul.mubr.bf16.vlgmr.msra.gmra.mxu0 %v464_v3 }
 0x407   :  { %v572_v0 = vpop.f32.mrf.mxu0 }
 0x408   :  { %v573_v6 = vadd.f32 %v629_v5, %v572_v0 }
 0x409   :  { %v760_v7 = vpop.f32.mrf.mxu0 }
 0x40a   :  { %578 = vst [vmem:[#allocation8] sm:$0xff] %v573_v6 }
 0x40b   :  { %v575_v8 = vpop.f32.mrf.mxu0 }
 0x40c   :  { %874 = shalt.err (!%p871_p5)
}
 0x40d   :  { %588 = dma.vmem_to_hbm [thread:$0]  %s586_s14, 128, %s996_s4, [#allocation4]   ;;  %v761_v9 = vpop.f32.mrf.mxu0 }
 0x40e   :  { %887 = dma.done.wait [#allocation4], 128  }
 0x40f   :  { %888 = vsyncadd [#allocation4], 4294967168 }
 0x410   :  { %592 = vsyncpa [#allocation3], 1 }
 0x411   :  { %593 = vsyncpa [#allocation6], 1 }
 0x412   :  { %594 = vsyncpa [#allocation4], 1 }

</bundles_post_ra>
